<compile_context>
chip_gen: v7x
topology: tpu7x:2x2x1
jax: 0.10.0
libtpu: 0.0.40
codegen_flags: <defaults>
</compile_context>

<pallas_src>
import math

import jax
import jax.numpy as jnp
from jax.experimental import pallas as pl
from jax.experimental.pallas import tpu as pltpu


# ----------------------------------------------------------------------------
# Pallas kernel
# ----------------------------------------------------------------------------
def _fused_conv_bn_kernel(x_ref, w_ref, scale_ref, bias_ref, o_ref, acc_ref):
    """Fused binarized 3x3 conv (mix/bias/BN folded) for one (row, col) output tile.

    x_ref:     (KH, TM, K)  bf16  pre-shifted (per-tap) sign-binarized input rows
    w_ref:     (KH, K, TN)  bf16  banded (row-Toeplitz) folded weight, column tile
    scale_ref: (1, TN)      f32   per-output-column BN scale
    bias_ref:  (1, TN)      f32   folded conv-bias * scale + BN bias
    o_ref:     (TM, TN)           output tile
    acc_ref:   (TM, TN)     f32   VMEM scratch accumulator
    """
    kh_taps = x_ref.shape[0]
    # KH lane-dense MXU matmuls, accumulated in a f32 VMEM scratch (MRB-friendly).
    acc_ref[...] = jnp.dot(x_ref[0], w_ref[0], preferred_element_type=jnp.float32)
    for kh in range(1, kh_taps):                       # unrolled: KH-1 more matmuls
        acc_ref[...] += jnp.dot(x_ref[kh], w_ref[kh],
                                preferred_element_type=jnp.float32)
    # Per-output-channel affine epilogue (BN + folded conv bias), lane-dense store.
    o_ref[...] = (acc_ref[...] * scale_ref[...] + bias_ref[...]).astype(o_ref.dtype)


# ----------------------------------------------------------------------------
# Hypernetwork (parameter generation) -- plain JAX glue
# ----------------------------------------------------------------------------
def _uniform(key, shape, bound):
    return jax.random.uniform(key, shape, jnp.float32, -bound, bound)


def _weight_norm_linear(x, w):
    # WeightNormlinear with scale=False, bias=False:
    #   y = (x @ w.T) / sqrt(sum(w**2, axis=1) + 1e-6)
    out = jnp.matmul(x, w.T)
    norm = jnp.sqrt(jnp.sum(w * w, axis=1) + 1e-6)
    return out / norm


def _hypernet_weights(z, fc0_w, fc2_w, fc3_w, out_c, in_c, k, e_dim):
    # StaticHypernetwork_Parrallel.forward (binarize=True, reweight=False)
    n_o, n_i, _ = z.shape
    bias = _weight_norm_linear(z.reshape(n_o, -1), fc0_w)          # (N_O, out_c)
    bias = bias.reshape(n_o * out_c)
    w = _weight_norm_linear(z, fc2_w)                              # (N_O, N_I, out_c*E)
    w = w.reshape(n_o, n_i, out_c, e_dim)
    # TODO(synk): reference uses F.dropout(training=True) here (stochastic even at
    #             eval); treated as identity (inference semantics).
    w = _weight_norm_linear(w, fc3_w)                              # (N_O, N_I, out_c, in_c*k*k)
    w = w.reshape(n_o, n_i, out_c, in_c, k, k)
    w = jnp.transpose(w, (0, 2, 1, 3, 4, 5)).reshape(n_o * out_c, n_i * in_c, k, k)
    return jnp.sign(w), jnp.sign(bias)                             # binarizew == sign


def init_params(key, in_chs=16, out_chs=16, kernel_size=3, z_dim=64):
    # identity=True path of BinarizeHyperConv2d: z_num = (out_chs/16, in_chs/16)
    n_o, n_i = out_chs // 16, in_chs // 16
    per_in_c, per_out_c = 16, 16
    keys = jax.random.split(key, 8)
    params = {}
    for idx, name in enumerate(("conv1", "conv2")):
        k0, k2, k3, kz = keys[idx * 4: idx * 4 + 4]
        stdv0 = 4.0 / math.sqrt(z_dim * n_i)     # WeightNormlinear init (factor=4)
        stdv23 = 4.0 / math.sqrt(z_dim)
        z_std = 5.0 / math.sqrt(z_dim)           # random_z.uniform_(-5/sqrt(E), 5/sqrt(E))
        params[name] = dict(
            fc0_w=_uniform(k0, (per_out_c, z_dim * n_i), stdv0),
            fc2_w=_uniform(k2, (per_out_c * z_dim, z_dim), stdv23),
            fc3_w=_uniform(k3, (per_in_c * kernel_size * kernel_size, z_dim), stdv23),
            z=_uniform(kz, (n_o, n_i, z_dim), z_std),
        )
    params["mix"] = jnp.ones((2,), jnp.float32)             # self.weight = [1., 1.]
    params["bn_gamma"] = jnp.ones((out_chs,), jnp.float32)
    params["bn_beta"] = jnp.zeros((out_chs,), jnp.float32)
    params["bn_mean"] = jnp.zeros((out_chs,), jnp.float32)
    params["bn_var"] = jnp.ones((out_chs,), jnp.float32)
    return params


# ----------------------------------------------------------------------------
# Tiling helper (review item #5/#6): footprint-aware, sublane/lane aligned
# ----------------------------------------------------------------------------
def _pick_tiles(MB, NB, K, KH, out_bytes, budget_bytes=20 << 20):
    """Pick (TM row-tile, TN col-tile, footprint_bytes).

    Accounts for the double-buffered banded weight, pre-shifted input taps,
    output tile, scale/bias rows and the f32 accumulator scratch.  TM is a
    multiple of 16 (bf16 sublane packing) / 8, TN a multiple of 128 (lane-dense
    stores); fall back to the full dim when no aligned divisor exists.
    """
    def _divs(n):
        return [d for d in range(n, 0, -1) if n % d == 0]

    tn_cands = [d for d in _divs(NB) if d % 128 == 0] or [NB]
    tm_all = ([d for d in _divs(MB) if d % 16 == 0]
              or [d for d in _divs(MB) if d % 8 == 0] or [MB])
    tm_cands = [d for d in tm_all if d <= 512] or [min(tm_all)]
    # Prefer deep matmuls (M >= 128) with an even number of row steps (balanced
    # megacore sharding on v7x); otherwise just the largest M.
    tm_cands = sorted(tm_cands,
                      key=lambda d: (d >= 128 and (MB // d) % 2 == 0, d),
                      reverse=True)

    def _footprint(tm, tn):
        w_b = 2 * KH * K * tn * 2        # banded weight col-tile (bf16, double-buffered)
        x_b = 2 * KH * tm * K * 2        # input tap row-tile     (bf16, double-buffered)
        o_b = 2 * tm * tn * out_bytes    # output tile            (double-buffered)
        sb_b = 2 * 2 * tn * 4            # scale + bias rows      (f32, double-buffered)
        acc_b = tm * tn * 4              # f32 accumulator scratch
        return w_b + x_b + o_b + sb_b + acc_b

    for tn in tn_cands:
        for tm in tm_cands:
            fp = _footprint(tm, tn)
            if fp <= budget_bytes:
                return tm, tn, fp
    tm, tn = min(tm_cands), min(tn_cands)
    return tm, tn, _footprint(tm, tn)


# ----------------------------------------------------------------------------
# Wrapper
# ----------------------------------------------------------------------------
def combinatorial_conv2d(x_nchw, params, kernel_size=3, padding=1, eps=1e-5,
                         tile_m=None, tile_n=None, out_dtype=jnp.float32):
    # layout: accepts PyTorch NCHW, kernel runs on flattened (N*H, W*C) rows, returns NCHW.
    N, C, H, W = x_nchw.shape
    out_c = params["bn_gamma"].shape[0]
    z_dim = params["conv1"]["z"].shape[-1]
    KH = KW = kernel_size
    p = padding
    assert 2 * p == KH - 1, "stride-1 'same' conv assumed (padding = (k-1)/2)"

    # ---- parameter generation (tiny hypernet matmuls) -- plain JAX ----
    w_oihw, biases = [], []
    for name in ("conv1", "conv2"):
        pr = params[name]
        wgt, b = _hypernet_weights(pr["z"], pr["fc0_w"], pr["fc2_w"], pr["fc3_w"],
                                   out_c=16, in_c=16, k=kernel_size, e_dim=z_dim)
        w_oihw.append(wgt)      # torch OIHW, entries in {-1, +1}
        biases.append(b)        # (Cout,), entries in {-1, +1}

    # ---- exact eval-mode algebraic fold: 2 convs + mix + bias + BN -> 1 conv + affine ----
    mix = params["mix"]
    w_mix = mix[0] * w_oihw[0] + mix[1] * w_oihw[1]        # (Cout, Cin, KH, KW) f32
    b_mix = mix[0] * biases[0] + mix[1] * biases[1]        # (Cout,)
    w_eff = jnp.transpose(w_mix, (2, 3, 1, 0))             # (KH, KW, Cin, Cout)
    # TODO(synk): with mix=[1,1] the folded weights are small integers (bf16-exact);
    #             for an arbitrary learned mix keep w_big in f32 instead.

    bn_scale = params["bn_gamma"] / jnp.sqrt(params["bn_var"] + eps)
    bn_bias = params["bn_beta"] - params["bn_mean"] * bn_scale
    bias_eff = bn_scale * b_mix + bn_bias                  # (Cout,)

    # ---- banded ("row-Toeplitz") expansion over the UNPADDED width (K = W*Cin) ----
    # w_big[kh, wi*Cin+ci, wo*Cout+co] = w_eff[kh, wi-wo+p, ci, co]  (0 off-band).
    # Dropping the padded width columns is exact: they only ever multiply zeros.
    eyes = jnp.stack([jnp.eye(W, W, k=p - kw, dtype=jnp.float32) for kw in range(KW)])
    w_big = jnp.einsum("kiw,hkcd->hicwd", eyes, w_eff)     # (KH, W, Cin, W, Cout)
    K = W * C
    NB = W * out_c
    w_big = w_big.reshape(KH, K, NB).astype(jnp.bfloat16)  # integer sums: bf16-exact

    scale_row = jnp.tile(bn_scale, W).reshape(1, NB).astype(jnp.float32)
    bias_row = jnp.tile(bias_eff, W).reshape(1, NB).astype(jnp.float32)

    # ---- activations: binarize in f32 (exact), ship bf16, row halo + pre-shifted taps ----
    # TODO(synk): reference binarizes only when in_channels != 3; this block always has
    #             16*k channels, so sign() is applied unconditionally here.
    x_nhwc = jnp.transpose(x_nchw, (0, 2, 3, 1)).astype(jnp.float32)
    xb = jnp.sign(x_nhwc).astype(jnp.bfloat16).reshape(N, H, K)   # sign(0)=0, exact in bf16
    x_pad = jnp.pad(xb, ((0, 0), (p, p), (0, 0)))                 # row halo only (no width pad)
    # Pre-shift the KH taps so batch and height merge into ONE contiguous M axis
    # (M = N*H): every grid step then runs deep MXU matmuls with no in-kernel halo
    # slicing.  Trades KH bf16 reads of a tiny 16-channel input for much better MXU
    # fill, and replaces the old halo-stack copy.
    taps = jnp.stack([x_pad[:, kh:kh + H, :] for kh in range(KH)], axis=0)
    MB = N * H
    taps = taps.reshape(KH, MB, K)

    out_bytes = jnp.dtype(out_dtype).itemsize
    tm, tn, footprint = _pick_tiles(MB, NB, K, KH, out_bytes)
    if tile_m is not None:
        tm = tile_m
    if tile_n is not None:
        tn = tile_n
    assert MB % tm == 0 and NB % tn == 0
    nr, nc = MB // tm, NB // tn
    # Size the scoped VMEM to the actual footprint (kept <= 48 MiB for v7x).
    vmem_limit = int(min(max(footprint + (8 << 20), 32 << 20), 48 << 20))

    out = pl.pallas_call(
        _fused_conv_bn_kernel,
        out_shape=jax.ShapeDtypeStruct((MB, NB), out_dtype),
        grid=(nc, nr),   # column tiles outer: the weight column block stays resident across row tiles
        in_specs=[
            pl.BlockSpec((KH, tm, K), lambda c, r: (0, r, 0)),    # pre-shifted input taps (row tile)
            pl.BlockSpec((KH, K, tn), lambda c, r: (0, 0, c)),    # banded weight (column tile)
            pl.BlockSpec((1, tn), lambda c, r: (0, c)),           # bn scale
            pl.BlockSpec((1, tn), lambda c, r: (0, c)),           # folded bias
        ],
        out_specs=pl.BlockSpec((tm, tn), lambda c, r: (r, c)),
        scratch_shapes=[pltpu.VMEM((tm, tn), jnp.float32)],
        compiler_params=pltpu.CompilerParams(
            dimension_semantics=("parallel", "parallel"),
            vmem_limit_bytes=vmem_limit),
    )(taps, w_big, scale_row, bias_row)

    out = out.reshape(N, H, W, out_c).astype(jnp.float32)
    return jnp.transpose(out, (0, 3, 1, 2))


# ----------------------------------------------------------------------------
# Pure-JAX reference (for sanity checking the kernel)
# ----------------------------------------------------------------------------
def _reference(x_nchw, params, kernel_size=3, padding=1, eps=1e-5):
    z_dim = params["conv1"]["z"].shape[-1]
    xb = jnp.sign(x_nchw)
    ys = []
    for name in ("conv1", "conv2"):
        pr = params[name]
        w, b = _hypernet_weights(pr["z"], pr["fc0_w"], pr["fc2_w"], pr["fc3_w"],
                                 out_c=16, in_c=16, k=kernel_size, e_dim=z_dim)
        y = jax.lax.conv_general_dilated(
            xb, w, window_strides=(1, 1),
            padding=[(padding, padding), (padding, padding)],
            dimension_numbers=("NCHW", "OIHW", "NCHW"))
        ys.append(y + b.reshape(1, -1, 1, 1))
    y = ys[0] * params["mix"][0] + ys[1] * params["mix"][1]
    scale = params["bn_gamma"] / jnp.sqrt(params["bn_var"] + eps)
    bias = params["bn_beta"] - params["bn_mean"] * scale
    return y * scale.reshape(1, -1, 1, 1) + bias.reshape(1, -1, 1, 1)


if __name__ == "__main__":
    # TODO(synk): the module is named BNReLUConv2d but its reference forward applies
    #             no ReLU/Hardtanh; none is applied here (matches the JAX reference).
    key = jax.random.PRNGKey(0)
    kx, kp = jax.random.split(key)
    # NCHW input; in_chs must be a multiple of 16 for the identity hyper-conv path.
    x = jax.random.normal(kx, (2, 16, 16, 16), jnp.float32)
    params = init_params(kp, in_chs=16, out_chs=16, kernel_size=3, z_dim=64)

    out = combinatorial_conv2d(x, params)
    out = jax.block_until_ready(out)

    ref = _reference(x, params)
    assert out.shape == ref.shape == (2, 16, 16, 16)
    assert jnp.allclose(out, ref, atol=1e-4, rtol=1e-4), "kernel mismatch vs reference"
    print("KERNEL_OK")
</pallas_src>

<mosaic_0001>
module attributes {stable_mosaic.version = 11 : i64} {
  func.func @_fused_conv_bn_kernel(%arg0: i32, %arg1: i32, %arg2: memref<3x32x256xbf16, #tpu.memory_space<vmem>>, %arg3: memref<3x256x256xbf16, #tpu.memory_space<vmem>>, %arg4: memref<1x256xf32, #tpu.memory_space<vmem>>, %arg5: memref<1x256xf32, #tpu.memory_space<vmem>>, %arg6: memref<32x256xf32, #tpu.memory_space<vmem>>, %arg7: memref<32x256xf32, #tpu.memory_space<vmem>>) attributes {dimension_semantics = [#tpu.dimension_semantics<parallel>, #tpu.dimension_semantics<parallel>], iteration_bounds = array<i64: 1, 1>, scalar_prefetch = 0 : i64, scratch_operands = 1 : i64, tpu.core_type = #tpu.core_type<tc>, window_params = [{transform_indices = @transform_0, window_bounds = array<i64: 3, 32, 256>}, {transform_indices = @transform_1, window_bounds = array<i64: 3, 256, 256>}, {transform_indices = @transform_2, window_bounds = array<i64: 1, 256>}, {transform_indices = @transform_3, window_bounds = array<i64: 1, 256>}, {transform_indices = @transform_4, window_bounds = array<i64: 32, 256>}]} {
    %c0 = arith.constant 0 : index
    %c0_0 = arith.constant 0 : index
    %c0_1 = arith.constant 0 : index
    %0 = vector.load %arg2[%c0, %c0_0, %c0_1] : memref<3x32x256xbf16, #tpu.memory_space<vmem>>, vector<1x32x256xbf16>
    %1 = vector.shape_cast %0 : vector<1x32x256xbf16> to vector<32x256xbf16>
    %c0_2 = arith.constant 0 : index
    %c0_3 = arith.constant 0 : index
    %c0_4 = arith.constant 0 : index
    %2 = vector.load %arg3[%c0_2, %c0_3, %c0_4] : memref<3x256x256xbf16, #tpu.memory_space<vmem>>, vector<1x256x256xbf16>
    %3 = vector.shape_cast %2 : vector<1x256x256xbf16> to vector<256x256xbf16>
    %cst = arith.constant dense<0.000000e+00> : vector<32x256xf32>
    %4 = tpu.matmul %1, %3, %cst {dimension_numbers = #tpu.dot_dimension_numbers<[1], [0], [0], [1], [0, 0, 1, 1], [], []>} : vector<32x256xbf16>, vector<256x256xbf16>, vector<32x256xf32> -> vector<32x256xf32>
    %c0_5 = arith.constant 0 : index
    %c0_6 = arith.constant 0 : index
    %5 = vector.load %arg7[%c0_5, %c0_6] : memref<32x256xf32, #tpu.memory_space<vmem>>, vector<32x256xf32>
    tpu.vector_store %arg7[%c0_5, %c0_6], %4 {strides = array<i32>} : memref<32x256xf32, #tpu.memory_space<vmem>>, vector<32x256xf32>,
    %c0_7 = arith.constant 0 : index
    %c0_8 = arith.constant 0 : index
    %6 = vector.load %arg7[%c0_7, %c0_8] : memref<32x256xf32, #tpu.memory_space<vmem>>, vector<32x256xf32>
    %c1 = arith.constant 1 : index
    %c0_9 = arith.constant 0 : index
    %c0_10 = arith.constant 0 : index
    %7 = vector.load %arg2[%c1, %c0_9, %c0_10] : memref<3x32x256xbf16, #tpu.memory_space<vmem>>, vector<1x32x256xbf16>
    %8 = vector.shape_cast %7 : vector<1x32x256xbf16> to vector<32x256xbf16>
    %c1_11 = arith.constant 1 : index
    %c0_12 = arith.constant 0 : index
    %c0_13 = arith.constant 0 : index
    %9 = vector.load %arg3[%c1_11, %c0_12, %c0_13] : memref<3x256x256xbf16, #tpu.memory_space<vmem>>, vector<1x256x256xbf16>
    %10 = vector.shape_cast %9 : vector<1x256x256xbf16> to vector<256x256xbf16>
    %cst_14 = arith.constant dense<0.000000e+00> : vector<32x256xf32>
    %11 = tpu.matmul %8, %10, %cst_14 {dimension_numbers = #tpu.dot_dimension_numbers<[1], [0], [0], [1], [0, 0, 1, 1], [], []>} : vector<32x256xbf16>, vector<256x256xbf16>, vector<32x256xf32> -> vector<32x256xf32>
    %12 = arith.addf %6, %11 : vector<32x256xf32>
    %c0_15 = arith.constant 0 : index
    %c0_16 = arith.constant 0 : index
    %13 = vector.load %arg7[%c0_15, %c0_16] : memref<32x256xf32, #tpu.memory_space<vmem>>, vector<32x256xf32>
    tpu.vector_store %arg7[%c0_15, %c0_16], %12 {strides = array<i32>} : memref<32x256xf32, #tpu.memory_space<vmem>>, vector<32x256xf32>,
    %c0_17 = arith.constant 0 : index
    %c0_18 = arith.constant 0 : index
    %14 = vector.load %arg7[%c0_17, %c0_18] : memref<32x256xf32, #tpu.memory_space<vmem>>, vector<32x256xf32>
    %c2 = arith.constant 2 : index
    %c0_19 = arith.constant 0 : index
    %c0_20 = arith.constant 0 : index
    %15 = vector.load %arg2[%c2, %c0_19, %c0_20] : memref<3x32x256xbf16, #tpu.memory_space<vmem>>, vector<1x32x256xbf16>
    %16 = vector.shape_cast %15 : vector<1x32x256xbf16> to vector<32x256xbf16>
    %c2_21 = arith.constant 2 : index
    %c0_22 = arith.constant 0 : index
    %c0_23 = arith.constant 0 : index
    %17 = vector.load %arg3[%c2_21, %c0_22, %c0_23] : memref<3x256x256xbf16, #tpu.memory_space<vmem>>, vector<1x256x256xbf16>
    %18 = vector.shape_cast %17 : vector<1x256x256xbf16> to vector<256x256xbf16>
    %cst_24 = arith.constant dense<0.000000e+00> : vector<32x256xf32>
    %19 = tpu.matmul %16, %18, %cst_24 {dimension_numbers = #tpu.dot_dimension_numbers<[1], [0], [0], [1], [0, 0, 1, 1], [], []>} : vector<32x256xbf16>, vector<256x256xbf16>, vector<32x256xf32> -> vector<32x256xf32>
    %20 = arith.addf %14, %19 : vector<32x256xf32>
    %c0_25 = arith.constant 0 : index
    %c0_26 = arith.constant 0 : index
    %21 = vector.load %arg7[%c0_25, %c0_26] : memref<32x256xf32, #tpu.memory_space<vmem>>, vector<32x256xf32>
    tpu.vector_store %arg7[%c0_25, %c0_26], %20 {strides = array<i32>} : memref<32x256xf32, #tpu.memory_space<vmem>>, vector<32x256xf32>,
    %c0_27 = arith.constant 0 : index
    %c0_28 = arith.constant 0 : index
    %22 = vector.load %arg7[%c0_27, %c0_28] : memref<32x256xf32, #tpu.memory_space<vmem>>, vector<32x256xf32>
    %c0_29 = arith.constant 0 : index
    %c0_30 = arith.constant 0 : index
    %23 = vector.load %arg4[%c0_29, %c0_30] : memref<1x256xf32, #tpu.memory_space<vmem>>, vector<1x256xf32>
    %24 = vector.broadcast %23 : vector<1x256xf32> to vector<32x256xf32>
    %25 = arith.mulf %22, %24 : vector<32x256xf32>
    %c0_31 = arith.constant 0 : index
    %c0_32 = arith.constant 0 : index
    %26 = vector.load %arg5[%c0_31, %c0_32] : memref<1x256xf32, #tpu.memory_space<vmem>>, vector<1x256xf32>
    %27 = vector.broadcast %26 : vector<1x256xf32> to vector<32x256xf32>
    %28 = arith.addf %25, %27 : vector<32x256xf32>
    %c0_33 = arith.constant 0 : index
    %c0_34 = arith.constant 0 : index
    %29 = vector.load %arg6[%c0_33, %c0_34] : memref<32x256xf32, #tpu.memory_space<vmem>>, vector<32x256xf32>
    tpu.vector_store %arg6[%c0_33, %c0_34], %28 {strides = array<i32>} : memref<32x256xf32, #tpu.memory_space<vmem>>, vector<32x256xf32>,
    return
  }
  func.func @transform_0(%arg0: i32, %arg1: i32) -> (i32, i32, i32) {
    %c0_i32 = arith.constant 0 : i32
    %c0_i32_0 = arith.constant 0 : i32
    %c0_i32_1 = arith.constant 0 : i32
    return %c0_i32, %arg1, %c0_i32_0 : i32, i32, i32
  }
  func.func @transform_1(%arg0: i32, %arg1: i32) -> (i32, i32, i32) {
    %c0_i32 = arith.constant 0 : i32
    %c0_i32_0 = arith.constant 0 : i32
    %c0_i32_1 = arith.constant 0 : i32
    return %c0_i32, %c0_i32_0, %arg0 : i32, i32, i32
  }
  func.func @transform_2(%arg0: i32, %arg1: i32) -> (i32, i32) {
    %c0_i32 = arith.constant 0 : i32
    %c0_i32_0 = arith.constant 0 : i32
    return %c0_i32, %arg0 : i32, i32
  }
  func.func @transform_3(%arg0: i32, %arg1: i32) -> (i32, i32) {
    %c0_i32 = arith.constant 0 : i32
    %c0_i32_0 = arith.constant 0 : i32
    return %c0_i32, %arg0 : i32, i32
  }
  func.func @transform_4(%arg0: i32, %arg1: i32) -> (i32, i32) {
    %c0_i32 = arith.constant 0 : i32
    return %arg1, %arg0 : i32, i32
  }
}

</mosaic_0001>

<bundles_post_ra>
// kernel: tpu_custom_call.1
= control target key start
LH: loop header
LB: loop body
LE: loop exit
PB: predicated region body
PF: predicated region fallthrough
CT: control target
= control target key end

     0   :  { %9 = vsyncpa [#allocation4], 0  ;;  %s1458_s0 = inlined_call_operand.hbm [shape: bf16[3,32,256], index: 0, kind: input, shape index: {}]   ;;  %s1459_s1 = inlined_call_operand.hbm [shape: bf16[3,256,256], index: 1, kind: input, shape index: {}]   ;;  %s1460_s2 = inlined_call_operand.vmem [shape: f32[1,256], index: 2, kind: input, shape index: {}]   ;;  %s1461_s3 = inlined_call_operand.vmem [shape: f32[1,256], index: 3, kind: input, shape index: {}]   ;;  %s1462_s4 = inlined_call_operand.hbm [shape: f32[32,256], index: 4, kind: output, shape index: {}]  }
   0x1   :  { %10 = vsyncpa [#allocation7], 0 }
   0x2   :  { %11 = vsyncpa [#allocation5], 0  ;;  %s1384_s15 = smov [#allocation3]   ;;  %s1312_s19 = scalar_lea.hbm %s1458_s0, 1536 }
   0x3   :  { %s17_s16 = sshll.u32 %s1384_s15, 4  ;;  %p1313_p0 = scmp.ne.s32.totalorder %s1458_s0, %s1312_s19  ;;  %s18_s16 = int_to_ptr.vmem [resolvable:$true] %s17_s16 }
   0x4   :  { %p1316_p1 = scmp.lt.u32.totalorder %s1312_s19, %s1458_s0 }
   0x6   :  { %p1318_p2 = pnand %p1316_p1, %p1313_p0 }
   0x8   :  { %1321 = shalt.err (!%p1318_p2)
}
   0x9   :  { %s1322_s24 = scalar_lea.vmem %s18_s16, 1536  ;;  %p1327_p4 = scmp.lt.s32.totalorder %s18_s16, %s18_s16 }
   0xa   :  { %p1323_p3 = scmp.ne.s32.totalorder %s18_s16, %s1322_s24  ;;  %p1328_p5 = scmp.lt.s32.totalorder %s1322_s24, %s1322_s24 }
   0xc   :  { %p1329_p6 = por %p1328_p5, %p1327_p4 }
   0xe   :  { %p1330_p7 = pnand %p1329_p6, %p1323_p3 }
  0x10   :  { %1333 = shalt.err (!%p1330_p7)
}
  0x11   :  { %s1385_s25 = smov 128   ;;  %s1386_s26 = smov 8  }
  0x12   :  { %23 = dma.hbm_to_vmem [thread:$0]  %s1458_s0, 1536, %s18_s16, [#allocation4], %s1385_s25, %s1385_s25, %s1386_s26  }
  0x13   :  { %s1387_s29 = smov [#allocation6]   ;;  %s1334_s7 = scalar_lea.hbm %s1459_s1, 12288 }
  0x14   :  { %s29_s30 = sshll.u32 %s1387_s29, 4  ;;  %p1335_p8 = scmp.ne.s32.totalorder %s1459_s1, %s1334_s7  ;;  %s30_s30 = int_to_ptr.vmem [resolvable:$true] %s29_s30 }
  0x15   :  { %p1338_p9 = scmp.lt.u32.totalorder %s1334_s7, %s1459_s1 }
  0x17   :  { %p1340_p10 = pnand %p1338_p9, %p1335_p8 }
  0x19   :  { %1343 = shalt.err (!%p1340_p10)
}
  0x1a   :  { %s1344_s12 = scalar_lea.vmem %s30_s30, 12288  ;;  %p1349_p12 = scmp.lt.s32.totalorder %s30_s30, %s30_s30 }
  0x1b   :  { %p1345_p11 = scmp.ne.s32.totalorder %s30_s30, %s1344_s12  ;;  %p1350_p13 = scmp.lt.s32.totalorder %s1344_s12, %s1344_s12 }
  0x1d   :  { %p1351_p0 = por %p1350_p13, %p1349_p12 }
  0x1f   :  { %p1352_p1 = pnand %p1351_p0, %p1345_p11 }
  0x21   :  { %1355 = shalt.err (!%p1352_p1)
}
  0x22   :  { %35 = dma.hbm_to_vmem [thread:$0]  %s1459_s1, 12288, %s30_s30, [#allocation7], %s1385_s25, %s1385_s25, %s1386_s26  }
  0x23   :  { %1378 = dma.done.wait [#allocation4], 1536  }
  0x24   :  { %1379 = vsyncadd [#allocation4], 4294965760 }
  0x25   :  { %1380 = dma.done.wait [#allocation7], 12288  }
  0x26   :  { %1381 = vsyncadd [#allocation7], 4294955008  ;;  %v1150_v0 = vld [vmem:[#allocation6 + $0x4] ss:$8 sps:$4 sm:$0xff]   ;;  %v1154_v2 = vld [vmem:[#allocation6] ss:$8 sps:$4 sm:$0xff]  }
  0x27   :  { %v1152_v1 = vld [vmem:[#allocation6 + $0x104] ss:$8 sps:$4 sm:$0xff]   ;;  %262 = vmatprep.subr.bf16.mxu1 %v1150_v0  ;;  %v1155_v3 = vld [vmem:[#allocation6 + $0x100] ss:$8 sps:$4 sm:$0xff]   ;;  %v1156_v4 = vld [vmem:[#allocation6 + $0x14] ss:$8 sps:$4 sm:$0xff]  }
  0x28   :  { %549 = vmatprep.subr.bf16.mxu0 %v1152_v1  ;;  %263 = vmatpush1.bf16.msra.mxu1 %v1154_v2  ;;  %v1158_v5 = vld [vmem:[#allocation6 + $0x114] ss:$8 sps:$4 sm:$0xff]   ;;  %v1160_v6 = vld [vmem:[#allocation6 + $0x10] ss:$8 sps:$4 sm:$0xff]   ;;  %v1162_v8 = vld [vmem:[#allocation6 + $0x24] ss:$8 sps:$4 sm:$0xff]  }
  0x29   :  { %550 = vmatpush1.bf16.msra.mxu0 %v1155_v3  ;;  %264 = vmatprep.subr.bf16.mxu1 %v1156_v4  ;;  %v1161_v7 = vld [vmem:[#allocation6 + $0x110] ss:$8 sps:$4 sm:$0xff]   ;;  %v1164_v9 = vld [vmem:[#allocation6 + $0x124] ss:$8 sps:$4 sm:$0xff]   ;;  %v1166_v10 = vld [vmem:[#allocation6 + $0x20] ss:$8 sps:$4 sm:$0xff]  }
  0x2a   :  { %551 = vmatprep.subr.bf16.mxu0 %v1158_v5  ;;  %v1167_v11 = vld [vmem:[#allocation6 + $0x120] ss:$8 sps:$4 sm:$0xff]   ;;  %v1168_v12 = vld [vmem:[#allocation6 + $0x34] ss:$8 sps:$4 sm:$0xff]   ;;  %v1172_v14 = vld [vmem:[#allocation6 + $0x30] ss:$8 sps:$4 sm:$0xff]  }
  0x2b   :  { %v1170_v13 = vld [vmem:[#allocation6 + $0x134] ss:$8 sps:$4 sm:$0xff]   ;;  %v1173_v15 = vld [vmem:[#allocation6 + $0x130] ss:$8 sps:$4 sm:$0xff]   ;;  %v1174_v16 = vld [vmem:[#allocation6 + $0x44] ss:$8 sps:$4 sm:$0xff]  }
  0x2c   :  { %265 = vmatpush1.bf16.msra.mxu1 %v1160_v6  ;;  %v1176_v17 = vld [vmem:[#allocation6 + $0x144] ss:$8 sps:$4 sm:$0xff]   ;;  %v1178_v18 = vld [vmem:[#allocation6 + $0x40] ss:$8 sps:$4 sm:$0xff]   ;;  %v1180_v20 = vld [vmem:[#allocation6 + $0x54] ss:$8 sps:$4 sm:$0xff]  }
  0x2d   :  { %552 = vmatpush1.bf16.msra.mxu0 %v1161_v7  ;;  %266 = vmatprep.subr.bf16.mxu1 %v1162_v8  ;;  %v1179_v19 = vld [vmem:[#allocation6 + $0x140] ss:$8 sps:$4 sm:$0xff]   ;;  %v1182_v21 = vld [vmem:[#allocation6 + $0x154] ss:$8 sps:$4 sm:$0xff]   ;;  %v1184_v22 = vld [vmem:[#allocation6 + $0x50] ss:$8 sps:$4 sm:$0xff]  }
  0x2e   :  { %553 = vmatprep.subr.bf16.mxu0 %v1164_v9  ;;  %v1185_v23 = vld [vmem:[#allocation6 + $0x150] ss:$8 sps:$4 sm:$0xff]   ;;  %v1186_v24 = vld [vmem:[#allocation6 + $0x64] ss:$8 sps:$4 sm:$0xff]   ;;  %v1190_v26 = vld [vmem:[#allocation6 + $0x60] ss:$8 sps:$4 sm:$0xff]  }
  0x2f   :  { %v1188_v25 = vld [vmem:[#allocation6 + $0x164] ss:$8 sps:$4 sm:$0xff]   ;;  %v1191_v27 = vld [vmem:[#allocation6 + $0x160] ss:$8 sps:$4 sm:$0xff]   ;;  %v1192_v28 = vld [vmem:[#allocation6 + $0x74] ss:$8 sps:$4 sm:$0xff]  }
  0x30   :  { %267 = vmatpush1.bf16.msra.mxu1 %v1166_v10  ;;  %v1194_v29 = vld [vmem:[#allocation6 + $0x174] ss:$8 sps:$4 sm:$0xff]   ;;  %v1196_v30 = vld [vmem:[#allocation6 + $0x70] ss:$8 sps:$4 sm:$0xff]   ;;  %v1198_v32 = vld [vmem:[#allocation6 + $0x84] ss:$8 sps:$4 sm:$0xff]  }
  0x31   :  { %554 = vmatpush1.bf16.msra.mxu0 %v1167_v11  ;;  %268 = vmatprep.subr.bf16.mxu1 %v1168_v12  ;;  %v1197_v31 = vld [vmem:[#allocation6 + $0x170] ss:$8 sps:$4 sm:$0xff]   ;;  %v1200_v33 = vld [vmem:[#allocation6 + $0x184] ss:$8 sps:$4 sm:$0xff]   ;;  %v1202_v34 = vld [vmem:[#allocation6 + $0x80] ss:$8 sps:$4 sm:$0xff]  }
  0x32   :  { %555 = vmatprep.subr.bf16.mxu0 %v1170_v13  ;;  %v1203_v35 = vld [vmem:[#allocation6 + $0x180] ss:$8 sps:$4 sm:$0xff]   ;;  %v1204_v36 = vld [vmem:[#allocation6 + $0x94] ss:$8 sps:$4 sm:$0xff]   ;;  %v1208_v38 = vld [vmem:[#allocation6 + $0x90] ss:$8 sps:$4 sm:$0xff]  }
  0x33   :  { %v1206_v37 = vld [vmem:[#allocation6 + $0x194] ss:$8 sps:$4 sm:$0xff]   ;;  %v1209_v39 = vld [vmem:[#allocation6 + $0x190] ss:$8 sps:$4 sm:$0xff]   ;;  %v1210_v40 = vld [vmem:[#allocation6 + $0xa4] ss:$8 sps:$4 sm:$0xff]  }
  0x34   :  { %269 = vmatpush1.bf16.msra.mxu1 %v1172_v14  ;;  %v1212_v41 = vld [vmem:[#allocation6 + $0x1a4] ss:$8 sps:$4 sm:$0xff]   ;;  %v1214_v42 = vld [vmem:[#allocation6 + $0xa0] ss:$8 sps:$4 sm:$0xff]   ;;  %v1216_v44 = vld [vmem:[#allocation6 + $0xb4] ss:$8 sps:$4 sm:$0xff]  }
  0x35   :  { %556 = vmatpush1.bf16.msra.mxu0 %v1173_v15  ;;  %270 = vmatprep.subr.bf16.mxu1 %v1174_v16  ;;  %v1215_v43 = vld [vmem:[#allocation6 + $0x1a0] ss:$8 sps:$4 sm:$0xff]   ;;  %v1218_v45 = vld [vmem:[#allocation6 + $0x1b4] ss:$8 sps:$4 sm:$0xff]   ;;  %v1220_v46 = vld [vmem:[#allocation6 + $0xb0] ss:$8 sps:$4 sm:$0xff]  }
  0x36   :  { %557 = vmatprep.subr.bf16.mxu0 %v1176_v17  ;;  %v1221_v47 = vld [vmem:[#allocation6 + $0x1b0] ss:$8 sps:$4 sm:$0xff]   ;;  %v1222_v48 = vld [vmem:[#allocation6 + $0xc4] ss:$8 sps:$4 sm:$0xff]   ;;  %v1226_v52 = vld [vmem:[#allocation6 + $0xc0] ss:$8 sps:$4 sm:$0xff]  }
  0x37   :  { %v1248_v49 = vld [vmem:[#allocation3 + $0x4] ss:$8 sps:$4 sm:$0xff]   ;;  %v1227_v53 = vld [vmem:[#allocation6 + $0x1c0] ss:$8 sps:$4 sm:$0xff]   ;;  %v1228_v54 = vld [vmem:[#allocation6 + $0xd4] ss:$8 sps:$4 sm:$0xff]  }
  0x38   :  { %271 = vmatpush1.bf16.msra.mxu1 %v1178_v18  ;;  %v1224_v50 = vld [vmem:[#allocation6 + $0x1c4] ss:$8 sps:$4 sm:$0xff]   ;;  %294 = vmatprep.mubr.bf16.mxu1 %v1248_v49  ;;  %v1230_v55 = vld [vmem:[#allocation6 + $0x1d4] ss:$8 sps:$4 sm:$0xff]   ;;  %v1232_v56 = vld [vmem:[#allocation6 + $0xd0] ss:$8 sps:$4 sm:$0xff]  }
  0x39   :  { %558 = vmatpush1.bf16.msra.mxu0 %v1179_v19  ;;  %272 = vmatprep.subr.bf16.mxu1 %v1180_v20  ;;  %v1251_v51 = vld [vmem:[#allocation3 + $0x24] ss:$8 sps:$4 sm:$0xff]   ;;  %v1233_v57 = vld [vmem:[#allocation6 + $0x1d0] ss:$8 sps:$4 sm:$0xff]   ;;  %v1238_v60 = vld [vmem:[#allocation6 + $0xe0] ss:$8 sps:$4 sm:$0xff]  }
  0x3a   :  { %559 = vmatprep.subr.bf16.mxu0 %v1182_v21  ;;  %581 = vmatprep.mubr.bf16.mxu0 %v1251_v51  ;;  %v1234_v58 = vld [vmem:[#allocation6 + $0xe4] ss:$8 sps:$4 sm:$0xff]   ;;  %v1239_v61 = vld [vmem:[#allocation6 + $0x1e0] ss:$8 sps:$4 sm:$0xff]   ;;  %v1240_v62 = vld [vmem:[#allocation6 + $0xf4] ss:$8 sps:$4 sm:$0xff]  }
  0x3b   :  { %v1236_v59 = vld [vmem:[#allocation6 + $0x1e4] ss:$8 sps:$4 sm:$0xff]   ;;  %v1242_v63 = vld [vmem:[#allocation6 + $0x1f4] ss:$8 sps:$4 sm:$0xff]   ;;  %v1244_v0 = vld [vmem:[#allocation6 + $0xf0] ss:$8 sps:$4 sm:$0xff]  }
  0x3c   :  { %273 = vmatpush1.bf16.msra.mxu1 %v1184_v22  ;;  %v1245_v1 = vld [vmem:[#allocation6 + $0x1f0] ss:$8 sps:$4 sm:$0xff]   ;;  %v1254_v2 = vld [vmem:[#allocation6 + $0x204] ss:$8 sps:$4 sm:$0xff]   ;;  %v1246_v3 = vld [vmem:[#allocation3] ss:$8 sps:$4 sm:$0xff]  }
  0x3d   :  { %560 = vmatpush1.bf16.msra.mxu0 %v1185_v23  ;;  %274 = vmatprep.subr.bf16.mxu1 %v1186_v24  ;;  %v1249_v4 = vld [vmem:[#allocation3 + $0x20] ss:$8 sps:$4 sm:$0xff]   ;;  %v1257_v6 = vld [vmem:[#allocation6 + $0x214] ss:$8 sps:$4 sm:$0xff]   ;;  %v1255_v9 = vld [vmem:[#allocation6 + $0x210] ss:$8 sps:$4 sm:$0xff]  }
  0x3e   :  { %561 = vmatprep.subr.bf16.mxu0 %v1188_v25  ;;  %v1252_v5 = vld [vmem:[#allocation6 + $0x200] ss:$8 sps:$4 sm:$0xff]   ;;  %v1291_v7 = vld [vmem:[#allocation3 + $0x14] ss:$8 sps:$4 sm:$0xff]   ;;  %v1260_v10 = vld [vmem:[#allocation6 + $0x224] ss:$8 sps:$4 sm:$0xff]  }
  0x3f   :  { %v1293_v8 = vld [vmem:[#allocation3 + $0x34] ss:$8 sps:$4 sm:$0xff]   ;;  %v1298_v11 = vld [vmem:[#allocation3 + $0x10] ss:$8 sps:$4 sm:$0xff]   ;;  %v1258_v13 = vld [vmem:[#allocation6 + $0x220] ss:$8 sps:$4 sm:$0xff]  }
  0x40   :  { %275 = vmatpush1.bf16.msra.mxu1 %v1190_v26  ;;  %v1299_v12 = vld [vmem:[#allocation3 + $0x30] ss:$8 sps:$4 sm:$0xff]   ;;  %v1263_v14 = vld [vmem:[#allocation6 + $0x234] ss:$8 sps:$4 sm:$0xff]   ;;  %v1308_v15 = vld [vmem:[#allocation3 + $0x44] ss:$8 sps:$4 sm:$0xff]  }
  0x41   :  { %562 = vmatpush1.bf16.msra.mxu0 %v1191_v27  ;;  %276 = vmatprep.subr.bf16.mxu1 %v1192_v28  ;;  %v1311_v16 = vld [vmem:[#allocation3 + $0x54] ss:$8 sps:$4 sm:$0xff]   ;;  %v1261_v17 = vld [vmem:[#allocation6 + $0x230] ss:$8 sps:$4 sm:$0xff]   ;;  %v1266_v18 = vld [vmem:[#allocation6 + $0x244] ss:$8 sps:$4 sm:$0xff]  }
  0x42   :  { %563 = vmatprep.subr.bf16.mxu0 %v1194_v29  ;;  %v1264_v19 = vld [vmem:[#allocation6 + $0x240] ss:$8 sps:$4 sm:$0xff]   ;;  %v1269_v20 = vld [vmem:[#allocation6 + $0x254] ss:$8 sps:$4 sm:$0xff]   ;;  %v1267_v21 = vld [vmem:[#allocation6 + $0x250] ss:$8 sps:$4 sm:$0xff]  }
  0x43   :  { %v1272_v22 = vld [vmem:[#allocation6 + $0x264] ss:$8 sps:$4 sm:$0xff]   ;;  %v1270_v23 = vld [vmem:[#allocation6 + $0x260] ss:$8 sps:$4 sm:$0xff]   ;;  %v1275_v24 = vld [vmem:[#allocation6 + $0x274] ss:$8 sps:$4 sm:$0xff]  }
  0x44   :  { %277 = vmatpush1.bf16.msra.mxu1 %v1196_v30  ;;  %v1273_v25 = vld [vmem:[#allocation6 + $0x270] ss:$8 sps:$4 sm:$0xff]   ;;  %v1278_v26 = vld [vmem:[#allocation6 + $0x284] ss:$8 sps:$4 sm:$0xff]   ;;  %v1276_v27 = vld [vmem:[#allocation6 + $0x280] ss:$8 sps:$4 sm:$0xff]  }
  0x45   :  { %564 = vmatpush1.bf16.msra.mxu0 %v1197_v31  ;;  %278 = vmatprep.subr.bf16.mxu1 %v1198_v32  ;;  %v1281_v28 = vld [vmem:[#allocation6 + $0x294] ss:$8 sps:$4 sm:$0xff]   ;;  %v1279_v29 = vld [vmem:[#allocation6 + $0x290] ss:$8 sps:$4 sm:$0xff]   ;;  %v1284_v30 = vld [vmem:[#allocation6 + $0x2a4] ss:$8 sps:$4 sm:$0xff]  }
  0x46   :  { %565 = vmatprep.subr.bf16.mxu0 %v1200_v33  ;;  %v1282_v31 = vld [vmem:[#allocation6 + $0x2a0] ss:$8 sps:$4 sm:$0xff]   ;;  %v1287_v32 = vld [vmem:[#allocation6 + $0x2b4] ss:$8 sps:$4 sm:$0xff]   ;;  %v1285_v33 = vld [vmem:[#allocation6 + $0x2b0] ss:$8 sps:$4 sm:$0xff]  }
  0x48   :  { %279 = vmatpush1.bf16.msra.mxu1 %v1202_v34  ;;  %v1290_v34 = vld [vmem:[#allocation6 + $0x2c4] ss:$8 sps:$4 sm:$0xff]  }
  0x49   :  { %566 = vmatpush1.bf16.msra.mxu0 %v1203_v35  ;;  %280 = vmatprep.subr.bf16.mxu1 %v1204_v36  ;;  %v1288_v35 = vld [vmem:[#allocation6 + $0x2c0] ss:$8 sps:$4 sm:$0xff]   ;;  %v1297_v36 = vld [vmem:[#allocation6 + $0x2d4] ss:$8 sps:$4 sm:$0xff]  }
  0x4a   :  { %567 = vmatprep.subr.bf16.mxu0 %v1206_v37  ;;  %v1295_v37 = vld [vmem:[#allocation6 + $0x2d0] ss:$8 sps:$4 sm:$0xff]  }
  0x4c   :  { %281 = vmatpush1.bf16.msra.mxu1 %v1208_v38  ;;  %v1302_v38 = vld [vmem:[#allocation6 + $0x2e4] ss:$8 sps:$4 sm:$0xff]  }
  0x4d   :  { %568 = vmatpush1.bf16.msra.mxu0 %v1209_v39  ;;  %282 = vmatprep.subr.bf16.mxu1 %v1210_v40  ;;  %v1300_v39 = vld [vmem:[#allocation6 + $0x2e0] ss:$8 sps:$4 sm:$0xff]   ;;  %v1305_v40 = vld [vmem:[#allocation6 + $0x2f4] ss:$8 sps:$4 sm:$0xff]  }
  0x4e   :  { %569 = vmatprep.subr.bf16.mxu0 %v1212_v41  ;;  %v1303_v41 = vld [vmem:[#allocation6 + $0x2f0] ss:$8 sps:$4 sm:$0xff]  }
  0x50   :  { %283 = vmatpush1.bf16.msra.mxu1 %v1214_v42  ;;  %v1306_v42 = vld [vmem:[#allocation3 + $0x40] ss:$8 sps:$4 sm:$0xff]  }
  0x51   :  { %570 = vmatpush1.bf16.msra.mxu0 %v1215_v43  ;;  %284 = vmatprep.subr.bf16.mxu1 %v1216_v44  ;;  %v1309_v43 = vld [vmem:[#allocation3 + $0x50] ss:$8 sps:$4 sm:$0xff]  }
  0x52   :  { %571 = vmatprep.subr.bf16.mxu0 %v1218_v45 }
  0x54   :  { %285 = vmatpush1.bf16.msra.mxu1 %v1220_v46 }
  0x55   :  { %572 = vmatpush1.bf16.msra.mxu0 %v1221_v47  ;;  %286 = vmatprep.subr.bf16.mxu1 %v1222_v48 }
  0x56   :  { %573 = vmatprep.subr.bf16.mxu0 %v1224_v50 }
  0x58   :  { %287 = vmatpush1.bf16.msra.mxu1 %v1226_v52 }
  0x59   :  { %574 = vmatpush1.bf16.msra.mxu0 %v1227_v53  ;;  %288 = vmatprep.subr.bf16.mxu1 %v1228_v54 }
  0x5a   :  { %575 = vmatprep.subr.bf16.mxu0 %v1230_v55 }
  0x5c   :  { %289 = vmatpush1.bf16.msra.mxu1 %v1232_v56 }
  0x5d   :  { %576 = vmatpush1.bf16.msra.mxu0 %v1233_v57  ;;  %290 = vmatprep.subr.bf16.mxu1 %v1234_v58 }
  0x5e   :  { %577 = vmatprep.subr.bf16.mxu0 %v1236_v59 }
  0x60   :  { %291 = vmatpush1.bf16.msra.mxu1 %v1238_v60  ;;  %v923_v60 = vlaneseq }
  0x61   :  { %578 = vmatpush1.bf16.msra.mxu0 %v1239_v61  ;;  %292 = vmatprep.subr.bf16.mxu1 %v1240_v62 }
  0x62   :  { %579 = vmatprep.subr.bf16.mxu0 %v1242_v63  ;;  %v924_v61 = vshrl.u32 %v923_v60, 7  ;;  %v921_v63 = vld [vmem:[%s1460_s2] sm:$0x3]  ;;  %s1388_s2 = smov [#allocation8]  }
  0x64   :  { %293 = vmatpush1.bf16.msra.mxu1 %v1244_v0  ;;  %v925_v62 = vsub.s32 0, %v924_v61  ;;  %v929_v0 = vsub.s32 1, %v924_v61 }
  0x65   :  { %580 = vmatpush1.bf16.msra.mxu0 %v1245_v1  ;;  %1095 = vmatprep.subr.bf16.mxu1 %v1254_v2  ;;  %v941_v1 = vld [vmem:[%s1461_s3] sm:$0x3]  ;;  %s974_s3 = sshll.u32 %s1388_s2, 4  ;;  %s975_s3 = int_to_ptr.vmem [resolvable:$true] %s974_s3 }
  0x66   :  { %844 = vmatprep.subr.bf16.mxu0 %v1254_v2  ;;  %v926_v2 = vrot.slane %v921_v63, %v925_v62  ;;  %s1356_s17 = scalar_lea.vmem %s975_s3, 1024  ;;  %p1361_p3 = scmp.lt.s32.totalorder %s975_s3, %s975_s3 }
  0x67   :  { %295 = vmatmul.mubr.bf16.vlgmr.msra.gmra.mrb[0].mxu1 %v1246_v3  ;;  %p1357_p2 = scmp.ne.s32.totalorder %s975_s3, %s1356_s17  ;;  %p1362_p4 = scmp.lt.s32.totalorder %s1356_s17, %s1356_s17 }
  0x68   :  { %582 = vmatmul.mubr.bf16.vlgmr.msra.gmra.mrb[0].mxu0 %v1249_v4  ;;  %1111 = vmatpush1.bf16.msra.mxu1 %v1252_v5 }
  0x69   :  { %845 = vmatpush1.bf16.msra.mxu0 %v1252_v5  ;;  %1096 = vmatprep.subr.bf16.mxu1 %v1257_v6  ;;  %v930_v5 = vrot.slane %v921_v63, %v929_v0  ;;  %p1363_p5 = por %p1362_p4, %p1361_p3 }
  0x6a   :  { %846 = vmatprep.subr.bf16.mxu0 %v1257_v6  ;;  %304 = vmatprep.mubr.bf16.mxu1 %v1291_v7  ;;  %v946_v7 = vrot.slane %v941_v1, %v925_v62 }
  0x6b   :  { %591 = vmatprep.mubr.bf16.mxu0 %v1293_v8  ;;  %p1364_p6 = pnand %p1363_p5, %p1357_p2 }
  0x6c   :  { %1112 = vmatpush1.bf16.msra.mxu1 %v1255_v9 }
  0x6d   :  { %847 = vmatpush1.bf16.msra.mxu0 %v1255_v9  ;;  %1097 = vmatprep.subr.bf16.mxu1 %v1260_v10 }
  0x6e   :  { %848 = vmatprep.subr.bf16.mxu0 %v1260_v10 }
  0x6f   :  { %305 = vmatmul.mubr.bf16.gmra.mrb[4].mxu1 %v1298_v11 }
  0x70   :  { %592 = vmatmul.mubr.bf16.gmra.mrb[4].mxu0 %v1299_v12  ;;  %1113 = vmatpush1.bf16.msra.mxu1 %v1258_v13  ;;  %v950_v12 = vrot.slane %v941_v1, %v929_v0 }
  0x71   :  { %849 = vmatpush1.bf16.msra.mxu0 %v1258_v13  ;;  %1098 = vmatprep.subr.bf16.mxu1 %v1263_v14 }
  0x72   :  { %850 = vmatprep.subr.bf16.mxu0 %v1263_v14  ;;  %876 = vmatprep.mubr.bf16.mxu0 %v1308_v15 }
  0x73   :  { %886 = vmatprep.mubr.bf16.mxu1 %v1311_v16 }
  0x74   :  { %1114 = vmatpush1.bf16.msra.mxu1 %v1261_v17 }
  0x75   :  { %851 = vmatpush1.bf16.msra.mxu0 %v1261_v17  ;;  %1099 = vmatprep.subr.bf16.mxu1 %v1266_v18 }
  0x76   :  { %852 = vmatprep.subr.bf16.mxu0 %v1266_v18 }
  0x78   :  { %1115 = vmatpush1.bf16.msra.mxu1 %v1264_v19 }
  0x79   :  { %853 = vmatpush1.bf16.msra.mxu0 %v1264_v19  ;;  %1100 = vmatprep.subr.bf16.mxu1 %v1269_v20 }
  0x7a   :  { %854 = vmatprep.subr.bf16.mxu0 %v1269_v20 }
  0x7c   :  { %1116 = vmatpush1.bf16.msra.mxu1 %v1267_v21 }
  0x7d   :  { %855 = vmatpush1.bf16.msra.mxu0 %v1267_v21  ;;  %1101 = vmatprep.subr.bf16.mxu1 %v1272_v22 }
  0x7e   :  { %856 = vmatprep.subr.bf16.mxu0 %v1272_v22 }
  0x80   :  { %1117 = vmatpush1.bf16.msra.mxu1 %v1270_v23 }
  0x81   :  { %857 = vmatpush1.bf16.msra.mxu0 %v1270_v23  ;;  %1102 = vmatprep.subr.bf16.mxu1 %v1275_v24 }
  0x82   :  { %858 = vmatprep.subr.bf16.mxu0 %v1275_v24 }
  0x84   :  { %1118 = vmatpush1.bf16.msra.mxu1 %v1273_v25 }
  0x85   :  { %859 = vmatpush1.bf16.msra.mxu0 %v1273_v25  ;;  %1103 = vmatprep.subr.bf16.mxu1 %v1278_v26 }
  0x86   :  { %860 = vmatprep.subr.bf16.mxu0 %v1278_v26 }
  0x88   :  { %1119 = vmatpush1.bf16.msra.mxu1 %v1276_v27 }
  0x89   :  { %861 = vmatpush1.bf16.msra.mxu0 %v1276_v27  ;;  %1104 = vmatprep.subr.bf16.mxu1 %v1281_v28 }
  0x8a   :  { %862 = vmatprep.subr.bf16.mxu0 %v1281_v28 }
  0x8c   :  { %1120 = vmatpush1.bf16.msra.mxu1 %v1279_v29 }
  0x8d   :  { %863 = vmatpush1.bf16.msra.mxu0 %v1279_v29  ;;  %1105 = vmatprep.subr.bf16.mxu1 %v1284_v30 }
  0x8e   :  { %864 = vmatprep.subr.bf16.mxu0 %v1284_v30 }
  0x90   :  { %1121 = vmatpush1.bf16.msra.mxu1 %v1282_v31 }
  0x91   :  { %865 = vmatpush1.bf16.msra.mxu0 %v1282_v31  ;;  %1106 = vmatprep.subr.bf16.mxu1 %v1287_v32 }
  0x92   :  { %866 = vmatprep.subr.bf16.mxu0 %v1287_v32 }
  0x94   :  { %1122 = vmatpush1.bf16.msra.mxu1 %v1285_v33 }
  0x95   :  { %867 = vmatpush1.bf16.msra.mxu0 %v1285_v33  ;;  %1107 = vmatprep.subr.bf16.mxu1 %v1290_v34 }
  0x96   :  { %868 = vmatprep.subr.bf16.mxu0 %v1290_v34 }
  0x98   :  { %1123 = vmatpush1.bf16.msra.mxu1 %v1288_v35 }
  0x99   :  { %869 = vmatpush1.bf16.msra.mxu0 %v1288_v35  ;;  %1108 = vmatprep.subr.bf16.mxu1 %v1297_v36 }
  0x9a   :  { %870 = vmatprep.subr.bf16.mxu0 %v1297_v36 }
  0x9c   :  { %1124 = vmatpush1.bf16.msra.mxu1 %v1295_v37 }
  0x9d   :  { %871 = vmatpush1.bf16.msra.mxu0 %v1295_v37  ;;  %1109 = vmatprep.subr.bf16.mxu1 %v1302_v38 }
  0x9e   :  { %872 = vmatprep.subr.bf16.mxu0 %v1302_v38 }
  0xa0   :  { %1125 = vmatpush1.bf16.msra.mxu1 %v1300_v39 }
  0xa1   :  { %873 = vmatpush1.bf16.msra.mxu0 %v1300_v39  ;;  %1110 = vmatprep.subr.bf16.mxu1 %v1305_v40 }
  0xa2   :  { %874 = vmatprep.subr.bf16.mxu0 %v1305_v40 }
  0xa4   :  { %1126 = vmatpush1.bf16.msra.mxu1 %v1303_v41 }
  0xa5   :  { %875 = vmatpush1.bf16.msra.mxu0 %v1303_v41 }
  0xa7   :  { %887 = vmatmul.mubr.bf16.vlgmr.msra.gmra.mrb[8].mxu1 %v1309_v43 }
  0xa8   :  { %877 = vmatmul.mubr.bf16.vlgmr.msra.gmra.mrb[0].mxu0 %v1306_v42 }
 0x13a   :  { %v296_v44 = vpop.f32.mrb[0].mxu1 }
 0x13b   :  { %v298_v45 = vpop.f32.mrb[1].mxu1 }
 0x13c   :  { %v300_v46 = vpop.f32.mrb[2].mxu1 }
 0x13d   :  { %v302_v47 = vpop.f32.mrb[3].mxu1 }
 0x142   :  { %v306_v48 = vpop.f32.mrb[4].mxu1 }
 0x143   :  { %v593_v49 = vpop.f32.mrb[4].mxu0  ;;  %v308_v51 = vpop.f32.mrb[5].mxu1 }
 0x144   :  { %v606_v50 = vadd.f32 %v593_v49, %v306_v48  ;;  %v595_v52 = vpop.f32.mrb[5].mxu0  ;;  %v310_v54 = vpop.f32.mrb[6].mxu1 }
 0x145   :  { %v607_v53 = vadd.f32 %v595_v52, %v308_v51  ;;  %v597_v55 = vpop.f32.mrb[6].mxu0  ;;  %v312_v57 = vpop.f32.mrb[7].mxu1 }
 0x146   :  { %v608_v56 = vadd.f32 %v597_v55, %v310_v54  ;;  %v599_v58 = vpop.f32.mrb[7].mxu0 }
 0x147   :  { %v609_v59 = vadd.f32 %v599_v58, %v312_v57 }
 0x17a   :  { %v888_v4 = vpop.f32.mrb[8].mxu1 }
 0x17b   :  { %v878_v3 = vpop.f32.mrb[0].mxu0  ;;  %v901_v8 = vadd.f32 %v888_v4, %v606_v50  ;;  %v890_v10 = vpop.f32.mrb[9].mxu1 }
 0x17c   :  { %v1127_v6 = vadd.f32 %v878_v3, %v296_v44  ;;  %v880_v9 = vpop.f32.mrb[1].mxu0  ;;  %v902_v13 = vadd.f32 %v890_v10, %v607_v53  ;;  %v892_v15 = vpop.f32.mrb[10].mxu1 }
 0x17d   :  { %v1128_v11 = vadd.f32 %v880_v9, %v298_v45  ;;  %v882_v14 = vpop.f32.mrb[2].mxu0  ;;  %v937_v17 = vmul.f32 %v926_v2, %v901_v8  ;;  %v903_v19 = vadd.f32 %v892_v15, %v608_v56  ;;  %v894_v21 = vpop.f32.mrb[11].mxu1 }
 0x17e   :  { %v933_v16 = vmul.f32 %v1127_v6, %v926_v2  ;;  %v1129_v18 = vadd.f32 %v882_v14, %v300_v46  ;;  %v884_v20 = vpop.f32.mrb[3].mxu0  ;;  %v938_v23 = vmul.f32 %v930_v5, %v902_v13  ;;  %v904_v25 = vadd.f32 %v894_v21, %v609_v59 }
 0x17f   :  { %v934_v22 = vmul.f32 %v1128_v11, %v930_v5  ;;  %v1130_v24 = vadd.f32 %v884_v20, %v302_v47  ;;  %v957_v27 = vadd.f32 %v946_v7, %v937_v17  ;;  %v939_v29 = vmul.f32 %v926_v2, %v903_v19 }
 0x180   :  { %v953_v26 = vadd.f32 %v946_v7, %v933_v16  ;;  %v935_v28 = vmul.f32 %v1129_v18, %v926_v2  ;;  %v958_v31 = vadd.f32 %v950_v12, %v938_v23  ;;  %v940_v33 = vmul.f32 %v930_v5, %v904_v25 }
 0x181   :  { %v954_v30 = vadd.f32 %v950_v12, %v934_v22  ;;  %v936_v32 = vmul.f32 %v1130_v24, %v930_v5  ;;  %965 = vst [vmem:[#allocation8 + $0x20] sm:$0xff] %v957_v27  ;;  %v959_v35 = vadd.f32 %v946_v7, %v939_v29 }
 0x182   :  { %961 = vst [vmem:[#allocation8] sm:$0xff] %v953_v26  ;;  %v955_v34 = vadd.f32 %v946_v7, %v935_v28  ;;  %966 = vst [vmem:[#allocation8 + $0x28] sm:$0xff] %v958_v31  ;;  %v960_v37 = vadd.f32 %v950_v12, %v940_v33 }
 0x183   :  { %962 = vst [vmem:[#allocation8 + $0x8] sm:$0xff] %v954_v30  ;;  %v956_v36 = vadd.f32 %v950_v12, %v936_v32  ;;  %967 = vst [vmem:[#allocation8 + $0x30] sm:$0xff] %v959_v35 }
 0x184   :  { %963 = vst [vmem:[#allocation8 + $0x10] sm:$0xff] %v955_v34  ;;  %968 = vst [vmem:[#allocation8 + $0x38] sm:$0xff] %v960_v37 }
 0x185   :  { %964 = vst [vmem:[#allocation8 + $0x18] sm:$0xff] %v956_v36 }
 0x186   :  { %1367 = shalt.err (!%p1364_p6)
}
 0x187   :  { %s1368_s20 = scalar_lea.hbm %s1462_s4, 1024 }
 0x188   :  { %p1369_p7 = scmp.ne.s32.totalorder %s1462_s4, %s1368_s20  ;;  %p1372_p8 = scmp.lt.u32.totalorder %s1368_s20, %s1462_s4 }
 0x18a   :  { %p1374_p9 = pnand %p1372_p8, %p1369_p7 }
 0x18c   :  { %1377 = shalt.err (!%p1374_p9)
}
 0x18d   :  { %s1389_s25 = smov 256   ;;  %s1390_s26 = smov 16  }
 0x18e   :  { %980 = dma.vmem_to_hbm [thread:$0]  %s975_s3, 1024, %s1462_s4, [#allocation5], %s1389_s25, %s1389_s25, %s1390_s26  }
 0x18f   :  { %1382 = dma.done.wait [#allocation5], 1024  }
 0x190   :  { %1383 = vsyncadd [#allocation5], 4294966272 }
 0x191   :  { %984 = vsyncpa [#allocation4], 1 }
 0x192   :  { %985 = vsyncpa [#allocation7], 1 }
 0x193   :  { %986 = vsyncpa [#allocation5], 1 }

</bundles_post_ra>
